<compile_context>
chip_gen: v7x
topology: tpu7x:2x2x1
jax: 0.10.0
libtpu: 0.0.40
codegen_flags: <defaults>
</compile_context>

<pallas_src>
import functools
import math

import jax
import jax.numpy as jnp
from jax import lax
from jax.experimental import pallas as pl
from jax.experimental.pallas import tpu as pltpu
from jax.scipy.special import gammaln, logsumexp


# --- rational Lanczos log-gamma (torch.lgamma equivalent; args here >= 1) ----
_LANCZOS_G = 7.0
_LANCZOS_COEF = (
    0.99999999999980993,
    676.5203681218851,
    -1259.1392167224028,
    771.32342877765313,
    -176.61502916214059,
    12.507343278686905,
    -0.13857109526572012,
    9.9843695780195716e-6,
    1.5056327351493116e-7,
)


def _poly_mul(a, b):
    out = [0.0] * (len(a) + len(b) - 1)
    for i, x in enumerate(a):
        for j, z in enumerate(b):
            out[i + j] += x * z
    return out


def _lanczos_rational_coeffs():
    """Expand  c0 + sum_i c_i/(t+i)  into num(t)/den(t)  with t = x - 1."""
    den = [1.0]
    for i in range(1, len(_LANCZOS_COEF)):
        den = _poly_mul(den, [float(i), 1.0])                 # * (t + i)
    num = [_LANCZOS_COEF[0] * c for c in den]                 # c0 * den
    for i in range(1, len(_LANCZOS_COEF)):
        part = [1.0]
        for k in range(1, len(_LANCZOS_COEF)):
            if k != i:
                part = _poly_mul(part, [float(k), 1.0])
        for j, c in enumerate(part):
            num[j] += _LANCZOS_COEF[i] * c
    return tuple(reversed(num)), tuple(reversed(den))         # highest-degree first


_LANCZOS_NUM, _LANCZOS_DEN = _lanczos_rational_coeffs()


def _lgamma(x):
    """log Gamma(x) for x >= 1 (Lanczos g=7, n=9), rational form:
    ONE divide + two Horner chains + two logs (was 8 divides)."""
    t = x - 1.0
    num = jnp.full_like(t, _LANCZOS_NUM[0])
    for c in _LANCZOS_NUM[1:]:
        num = num * t + c
    den = jnp.full_like(t, _LANCZOS_DEN[0])
    for c in _LANCZOS_DEN[1:]:
        den = den * t + c
    acc = num / den
    u = t + _LANCZOS_G + 0.5
    return (0.5 * math.log(2.0 * math.pi)
            + (t + 0.5) * jnp.log(u) - u + jnp.log(acc))


def _lp_loss_kernel(pp1_t_ref, w_t_ref, y_col_ref, y_row_ref, out_ref, *,
                    inv_bw, lgamma_const, p, lambda_bce, inv_n, n, use_bf16_exp):
    f32 = jnp.float32
    EPS = 1e-7          # keeps log(f), log(1-f) finite (reference would NaN at 0/1)
    NEG_BIG = -1e30     # reference adds torch.finfo(float).min on the diagonal

    pp1_t = pp1_t_ref[...]          # (M, N) class-1 member predictions (transposed)
    w_t = w_t_ref[...]              # (M, N) convex weights (transposed)
    y_col = y_col_ref[...]          # (N, 1) labels, kernel-center (j) orientation
    y_row = y_row_ref[...]          # (1, N) labels, sample (i) orientation

    # ---- convex mixture f_i = sum_m w[m,i] * p1[m,i]: VPU mul + sublane reduce.
    f_row = jnp.sum(w_t * pp1_t, axis=0, keepdims=True)           # (1, N)
    f_row = jnp.clip(f_row, EPS, 1.0 - EPS)

    # ---- per-sample (i) quantities, all lane-dense (1, N) ------------------
    lf_row = jnp.log(f_row)                                       # log f_i
    l1f_row = jnp.log(1.0 - f_row)                                # log (1 - f_i)
    dlf_row = lf_row - l1f_row
    r2_row = inv_bw * l1f_row
    a_row = f_row * inv_bw                                        # p - 1 at center f
    b_row = (1.0 - f_row) * inv_bw                                # q - 1 at center f
    # lgamma(p) + lgamma(q) with ONE stacked lane-dense call ((2,N) = one vreg);
    # lgamma(p + q) = lgamma(1/bw + 2) is a compile-time constant.
    pq = jnp.concatenate([a_row + 1.0, b_row + 1.0], axis=0)      # (2, N)
    lgB_row = jnp.sum(_lgamma(pq), axis=0, keepdims=True) - lgamma_const   # (1, N)

    # ---- ONE relayout per per-center column (no column-form lgamma) --------
    # Identity matmul on the otherwise-idle MXU; HIGHEST precision keeps the
    # relayout exact.  The iota/eye is reused below for diagonal exclusion.
    eye_b = (lax.broadcasted_iota(jnp.int32, (n, n), 0)
             == lax.broadcasted_iota(jnp.int32, (n, n), 1))       # (N, N) bool
    eye_f = eye_b.astype(f32)

    def to_col(v_row):          # exact (1, N) -> (N, 1) relayout via the MXU
        return lax.dot_general(eye_f, v_row, (((1,), (1,)), ((), ())),
                               preferred_element_type=f32,
                               precision=lax.Precision.HIGHEST)

    a_col = to_col(a_row)                                         # (N, 1)
    lgB_col = to_col(lgB_row)                                     # (N, 1)

    # ---- N x N log-kernel L[j, i] = log BetaPDF(f_i ; center f_j) ----------
    #   (p_j-1) log f_i + (q_j-1) log(1-f_i) - log B(p_j, q_j)
    #   = a_j * (log f_i - log(1-f_i)) + (1/bw) * log(1-f_i) - lgB_j
    L = a_col * dlf_row + r2_row - lgB_col                        # (N, N)
    # Reference-style leave-one-out: float-min on the diagonal BEFORE the max,
    # so exp() zeroes it exactly (no cancellation at small bandwidth).
    L = jnp.where(eye_b, NEG_BIG, L)

    # ---- single shared exp pass (row-max shift cancels in the ratio) -------
    m_row = jnp.max(L, axis=0, keepdims=True)                     # (1, N) off-diag max
    Ls = L - m_row
    if use_bf16_exp:
        # v6e/v7x only (bf16 EUP ~2x f32); accumulate in f32.
        e = jnp.exp(Ls.astype(jnp.bfloat16)).astype(f32)          # (N, N)
    else:
        e = jnp.exp(Ls)                                           # (N, N)
    sum_all = jnp.sum(e, axis=0, keepdims=True)                   # (1, N), >= 1
    sum_pos = jnp.sum(y_col * e, axis=0, keepdims=True)           # (1, N)
    ratio = jnp.clip(sum_pos / jnp.maximum(sum_all, 1e-30), 0.0, 1.0)

    d = jnp.abs(ratio - f_row)
    if p == 2:
        diff = d * d
    elif p == 1:
        diff = d
    else:
        diff = d ** p                                             # (1, N)

    # Reference's "exactly one positive label" branch: that single positive
    # sample is dropped from the sum (denominator stays N).  Robust count test.
    cnt_pos = jnp.sum(y_row, axis=1, keepdims=True)               # (1, 1)
    one_pos = jnp.abs(cnt_pos - 1.0) < 0.5
    keep = jnp.where(one_pos & (y_row > 0.5), 0.0, 1.0)           # (1, N)

    total = (2.0 * inv_n) * jnp.sum(diff * keep, axis=1, keepdims=True)   # (1, 1)

    if lambda_bce > 0.0:
        # torch.nn.BCELoss (mean reduction, log clamped at -100); reuses logs.
        # NOTE: with the EPS clamp the -100 clamp is effectively dead code.
        bce = -inv_n * jnp.sum(
            y_row * jnp.maximum(lf_row, -100.0)
            + (1.0 - y_row) * jnp.maximum(l1f_row, -100.0),
            axis=1, keepdims=True)                                # (1, 1)
        total = total + lambda_bce * bce

    out_ref[...] = total.astype(out_ref.dtype)


def lp_loss(p_preds, weights_l, y, *, bw, p=2, lambda_bce=0.0, use_bf16_exp=False):
    """JAX/Pallas equivalent of LpLoss(bw, p, lambda_bce).forward(p_preds, weights_l, y).

    p_preds:   (N, M, 2) per-ensemble-member class probabilities
    weights_l: (N, M)    convex-combination weights
    y:         (N,)      labels in {0, 1}
    use_bf16_exp: run the dominant NxN exp in bf16 (v6e/v7x only; validate
                  against the f32 reference first; keep False on v5e).
    Returns a scalar float32 loss.
    """
    n, m, k = p_preds.shape
    assert k == 2, "binary LpLoss expects K == 2"

    # (M, N) layouts so the in-kernel mixture reduce is a cheap sublane reduce.
    pp1_t = jnp.transpose(p_preds[:, :, 1].astype(jnp.float32))   # (M, N)
    w_t = jnp.transpose(weights_l.astype(jnp.float32))            # (M, N)
    y_f = y.astype(jnp.float32)
    y_col = y_f.reshape(n, 1)                                     # (N, 1)
    y_row = y_f.reshape(1, n)                                     # (1, N)

    inv_bw = 1.0 / float(bw)
    kern = functools.partial(
        _lp_loss_kernel,
        inv_bw=inv_bw,
        lgamma_const=float(math.lgamma(inv_bw + 2.0)),            # lgamma(p+q) const
        p=int(p),
        lambda_bce=float(lambda_bce),
        inv_n=1.0 / float(n),
        n=int(n),
        use_bf16_exp=bool(use_bf16_exp),
    )
    cost = pl.CostEstimate(
        flops=int(2 * n * m + 8 * n * n + 64 * n),
        transcendentals=int(n * n + 8 * n),
        bytes_accessed=int(4 * (2 * m * n + 2 * n) + 4),
    )
    out = pl.pallas_call(
        kern,
        out_shape=jax.ShapeDtypeStruct((1, 1), jnp.float32),
        in_specs=[pl.BlockSpec(memory_space=pltpu.MemorySpace.VMEM)] * 4,
        out_specs=pl.BlockSpec(memory_space=pltpu.MemorySpace.VMEM),
        cost_estimate=cost,
    )(pp1_t, w_t, y_col, y_row)
    return out[0, 0]


def _lp_loss_reference(p_preds, weights_l, y, *, bw, p=2, lambda_bce=0.0):
    """Independent pure-JAX (XLA) reference mirroring the PyTorch module."""
    eps = 1e-7
    f = jnp.clip(jnp.sum(weights_l * p_preds[:, :, 1], axis=1), eps, 1.0 - eps)
    n = f.shape[0]
    a = f / bw
    b = (1.0 - f) / bw
    lgB = gammaln(a + 1.0) + gammaln(b + 1.0) - math.lgamma(1.0 / bw + 2.0)
    logk = (a[None, :] * jnp.log(f)[:, None]
            + b[None, :] * jnp.log(1.0 - f)[:, None]
            - lgB[None, :])                                        # logk[i, j]
    logk = jnp.where(jnp.eye(n, dtype=bool), jnp.finfo(jnp.float32).min, logk)
    log_den = logsumexp(logk, axis=1)
    log_num = logsumexp(logk, axis=1, b=(y[None, :] > 0.5).astype(jnp.float32))
    ratio = jnp.exp(log_num - log_den)
    diff = jnp.abs(ratio - f) ** p
    npos = jnp.sum(y)
    diff = jnp.where((jnp.abs(npos - 1.0) < 0.5) & (y > 0.5), 0.0, diff)
    loss = 2.0 * jnp.sum(diff) / n
    if lambda_bce > 0.0:
        loss = loss + lambda_bce * (
            -jnp.mean(y * jnp.log(f) + (1.0 - y) * jnp.log(1.0 - f)))
    return loss


if __name__ == "__main__":
    key = jax.random.PRNGKey(0)
    k1, k2, k3 = jax.random.split(key, 3)

    N, M = 128, 8
    # Deterministic synthetic inputs consistent with the module's forward:
    p1 = jax.nn.sigmoid(jax.random.normal(k1, (N, M), dtype=jnp.float32))
    p_preds = jnp.stack([1.0 - p1, p1], axis=-1)                        # (N, M, 2)
    weights_l = jax.nn.softmax(jax.random.normal(k2, (N, M), dtype=jnp.float32), axis=-1)
    y = (jax.random.uniform(k3, (N,)) < 0.5).astype(jnp.float32)        # (N,)

    loss = lp_loss(p_preds, weights_l, y, bw=0.1, p=2, lambda_bce=0.5)
    loss = jax.block_until_ready(loss)
    assert bool(jnp.isfinite(loss)), loss

    # Cross-check against an independent pure-JAX reference (gammaln/logsumexp).
    ref = float(jax.block_until_ready(
        _lp_loss_reference(p_preds, weights_l, y, bw=0.1, p=2, lambda_bce=0.5)))
    assert abs(float(loss) - ref) <= 1e-3 + 5e-3 * abs(ref), (float(loss), ref)
    print("KERNEL_OK")
</pallas_src>

<mosaic_0001>
module attributes {stable_mosaic.version = 11 : i64} {
  func.func @_lp_loss_kernel(%arg0: memref<8x128xf32, #tpu.memory_space<vmem>>, %arg1: memref<8x128xf32, #tpu.memory_space<vmem>>, %arg2: memref<128x1xf32, #tpu.memory_space<vmem>>, %arg3: memref<1x128xf32, #tpu.memory_space<vmem>>, %arg4: memref<1x1xf32, #tpu.memory_space<vmem>>) attributes {dimension_semantics = [], scalar_prefetch = 0 : i64, scratch_operands = 0 : i64, tpu.core_type = #tpu.core_type<tc>} {
    %c0 = arith.constant 0 : index
    %c0_0 = arith.constant 0 : index
    %0 = vector.load %arg0[%c0, %c0_0] : memref<8x128xf32, #tpu.memory_space<vmem>>, vector<8x128xf32>
    %c0_1 = arith.constant 0 : index
    %c0_2 = arith.constant 0 : index
    %1 = vector.load %arg1[%c0_1, %c0_2] : memref<8x128xf32, #tpu.memory_space<vmem>>, vector<8x128xf32>
    %c0_3 = arith.constant 0 : index
    %c0_4 = arith.constant 0 : index
    %2 = vector.load %arg2[%c0_3, %c0_4] : memref<128x1xf32, #tpu.memory_space<vmem>>, vector<128x1xf32>
    %c0_5 = arith.constant 0 : index
    %c0_6 = arith.constant 0 : index
    %3 = vector.load %arg3[%c0_5, %c0_6] : memref<1x128xf32, #tpu.memory_space<vmem>>, vector<1x128xf32>
    %4 = arith.mulf %1, %0 : vector<8x128xf32>
    %cst = arith.constant dense<0.000000e+00> : vector<128xf32>
    %5 = vector.multi_reduction <add>, %4, %cst [0] : vector<8x128xf32> to vector<128xf32>
    %6 = vector.shape_cast %5 : vector<128xf32> to vector<1x128xf32>
    %cst_7 = arith.constant 1.000000e-07 : f32
    %cst_8 = arith.constant 0.99999988 : f32
    %7 = vector.broadcast %cst_7 : f32 to vector<1x128xf32>
    %8 = arith.maximumf %7, %6 : vector<1x128xf32>
    %9 = vector.broadcast %cst_8 : f32 to vector<1x128xf32>
    %10 = arith.minimumf %9, %8 : vector<1x128xf32>
    %11 = math.log %10 : vector<1x128xf32>
    %cst_9 = arith.constant 1.000000e+00 : f32
    %12 = vector.broadcast %cst_9 : f32 to vector<1x128xf32>
    %13 = arith.subf %12, %10 : vector<1x128xf32>
    %14 = math.log %13 : vector<1x128xf32>
    %15 = arith.subf %11, %14 : vector<1x128xf32>
    %cst_10 = arith.constant 1.000000e+01 : f32
    %16 = vector.broadcast %cst_10 : f32 to vector<1x128xf32>
    %17 = arith.mulf %16, %14 : vector<1x128xf32>
    %cst_11 = arith.constant 1.000000e+01 : f32
    %18 = vector.broadcast %cst_11 : f32 to vector<1x128xf32>
    %19 = arith.mulf %10, %18 : vector<1x128xf32>
    %cst_12 = arith.constant 1.000000e+00 : f32
    %20 = vector.broadcast %cst_12 : f32 to vector<1x128xf32>
    %21 = arith.subf %20, %10 : vector<1x128xf32>
    %cst_13 = arith.constant 1.000000e+01 : f32
    %22 = vector.broadcast %cst_13 : f32 to vector<1x128xf32>
    %23 = arith.mulf %21, %22 : vector<1x128xf32>
    %cst_14 = arith.constant 1.000000e+00 : f32
    %24 = vector.broadcast %cst_14 : f32 to vector<1x128xf32>
    %25 = arith.addf %19, %24 : vector<1x128xf32>
    %cst_15 = arith.constant 1.000000e+00 : f32
    %26 = vector.broadcast %cst_15 : f32 to vector<1x128xf32>
    %27 = arith.addf %23, %26 : vector<1x128xf32>
    %28 = tpu.concatenate %25, %27 in 0 : vector<1x128xf32>, vector<1x128xf32> -> vector<2x128xf32>
    %cst_16 = arith.constant 1.000000e+00 : f32
    %29 = vector.broadcast %cst_16 : f32 to vector<2x128xf32>
    %30 = arith.subf %28, %29 : vector<2x128xf32>
    %cst_17 = arith.constant 1.000000e+00 : f32
    %31 = vector.broadcast %cst_17 : f32 to vector<2x128xf32>
    %32 = arith.mulf %31, %30 : vector<2x128xf32>
    %cst_18 = arith.constant 60.4583321 : f32
    %33 = vector.broadcast %cst_18 : f32 to vector<2x128xf32>
    %34 = arith.addf %32, %33 : vector<2x128xf32>
    %35 = arith.mulf %34, %30 : vector<2x128xf32>
    %cst_19 = arith.constant 1599.04248 : f32
    %36 = vector.broadcast %cst_19 : f32 to vector<2x128xf32>
    %37 = arith.addf %35, %36 : vector<2x128xf32>
    %38 = arith.mulf %37, %30 : vector<2x128xf32>
    %cst_20 = arith.constant 24165.5098 : f32
    %39 = vector.broadcast %cst_20 : f32 to vector<2x128xf32>
    %40 = arith.addf %38, %39 : vector<2x128xf32>
    %41 = arith.mulf %40, %30 : vector<2x128xf32>
    %cst_21 = arith.constant 228235.219 : f32
    %42 = vector.broadcast %cst_21 : f32 to vector<2x128xf32>
    %43 = arith.addf %41, %42 : vector<2x128xf32>
    %44 = arith.mulf %43, %30 : vector<2x128xf32>
    %cst_22 = arith.constant 1379496.25 : f32
    %45 = vector.broadcast %cst_22 : f32 to vector<2x128xf32>
    %46 = arith.addf %44, %45 : vector<2x128xf32>
    %47 = arith.mulf %46, %30 : vector<2x128xf32>
    %cst_23 = arith.constant 0x4A9F05EA : f32
    %48 = vector.broadcast %cst_23 : f32 to vector<2x128xf32>
    %49 = arith.addf %47, %48 : vector<2x128xf32>
    %50 = arith.mulf %49, %30 : vector<2x128xf32>
    %cst_24 = arith.constant 0x4B2B9D51 : f32
    %51 = vector.broadcast %cst_24 : f32 to vector<2x128xf32>
    %52 = arith.addf %50, %51 : vector<2x128xf32>
    %53 = arith.mulf %52, %30 : vector<2x128xf32>
    %cst_25 = arith.constant 0x4B220ADA : f32
    %54 = vector.broadcast %cst_25 : f32 to vector<2x128xf32>
    %55 = arith.addf %53, %54 : vector<2x128xf32>
    %cst_26 = arith.constant 1.000000e+00 : f32
    %56 = vector.broadcast %cst_26 : f32 to vector<2x128xf32>
    %57 = arith.mulf %56, %30 : vector<2x128xf32>
    %cst_27 = arith.constant 3.600000e+01 : f32
    %58 = vector.broadcast %cst_27 : f32 to vector<2x128xf32>
    %59 = arith.addf %57, %58 : vector<2x128xf32>
    %60 = arith.mulf %59, %30 : vector<2x128xf32>
    %cst_28 = arith.constant 5.460000e+02 : f32
    %61 = vector.broadcast %cst_28 : f32 to vector<2x128xf32>
    %62 = arith.addf %60, %61 : vector<2x128xf32>
    %63 = arith.mulf %62, %30 : vector<2x128xf32>
    %cst_29 = arith.constant 4.536000e+03 : f32
    %64 = vector.broadcast %cst_29 : f32 to vector<2x128xf32>
    %65 = arith.addf %63, %64 : vector<2x128xf32>
    %66 = arith.mulf %65, %30 : vector<2x128xf32>
    %cst_30 = arith.constant 2.244900e+04 : f32
    %67 = vector.broadcast %cst_30 : f32 to vector<2x128xf32>
    %68 = arith.addf %66, %67 : vector<2x128xf32>
    %69 = arith.mulf %68, %30 : vector<2x128xf32>
    %cst_31 = arith.constant 6.728400e+04 : f32
    %70 = vector.broadcast %cst_31 : f32 to vector<2x128xf32>
    %71 = arith.addf %69, %70 : vector<2x128xf32>
    %72 = arith.mulf %71, %30 : vector<2x128xf32>
    %cst_32 = arith.constant 1.181240e+05 : f32
    %73 = vector.broadcast %cst_32 : f32 to vector<2x128xf32>
    %74 = arith.addf %72, %73 : vector<2x128xf32>
    %75 = arith.mulf %74, %30 : vector<2x128xf32>
    %cst_33 = arith.constant 1.095840e+05 : f32
    %76 = vector.broadcast %cst_33 : f32 to vector<2x128xf32>
    %77 = arith.addf %75, %76 : vector<2x128xf32>
    %78 = arith.mulf %77, %30 : vector<2x128xf32>
    %cst_34 = arith.constant 4.032000e+04 : f32
    %79 = vector.broadcast %cst_34 : f32 to vector<2x128xf32>
    %80 = arith.addf %78, %79 : vector<2x128xf32>
    %81 = arith.divf %55, %80 : vector<2x128xf32>
    %cst_35 = arith.constant 7.000000e+00 : f32
    %82 = vector.broadcast %cst_35 : f32 to vector<2x128xf32>
    %83 = arith.addf %30, %82 : vector<2x128xf32>
    %cst_36 = arith.constant 5.000000e-01 : f32
    %84 = vector.broadcast %cst_36 : f32 to vector<2x128xf32>
    %85 = arith.addf %83, %84 : vector<2x128xf32>
    %cst_37 = arith.constant 5.000000e-01 : f32
    %86 = vector.broadcast %cst_37 : f32 to vector<2x128xf32>
    %87 = arith.addf %30, %86 : vector<2x128xf32>
    %88 = math.log %85 : vector<2x128xf32>
    %89 = arith.mulf %87, %88 : vector<2x128xf32>
    %cst_38 = arith.constant 0.918938517 : f32
    %90 = vector.broadcast %cst_38 : f32 to vector<2x128xf32>
    %91 = arith.addf %90, %89 : vector<2x128xf32>
    %92 = arith.subf %91, %85 : vector<2x128xf32>
    %93 = math.log %81 : vector<2x128xf32>
    %94 = arith.addf %92, %93 : vector<2x128xf32>
    %cst_39 = arith.constant dense<0.000000e+00> : vector<128xf32>
    %95 = vector.multi_reduction <add>, %94, %cst_39 [0] : vector<2x128xf32> to vector<128xf32>
    %96 = vector.shape_cast %95 : vector<128xf32> to vector<1x128xf32>
    %cst_40 = arith.constant 17.5023079 : f32
    %97 = vector.broadcast %cst_40 : f32 to vector<1x128xf32>
    %98 = arith.subf %96, %97 : vector<1x128xf32>
    %99 = tpu.iota {dimensions = array<i32: 0>} : vector<128x128xi32>
    %100 = tpu.iota {dimensions = array<i32: 1>} : vector<128x128xi32>
    %101 = arith.cmpi eq, %99, %100 : vector<128x128xi32>
    %102 = arith.extui %101 : vector<128x128xi1> to vector<128x128xi32>
    %103 = arith.sitofp %102 : vector<128x128xi32> to vector<128x128xf32>
    %cst_41 = arith.constant dense<0.000000e+00> : vector<128x1xf32>
    %104 = tpu.matmul %103, %19, %cst_41 {dimension_numbers = #tpu.dot_dimension_numbers<[1], [1], [0], [0], [0, 0, 1, 0], [], []>, precision = #tpu.contract_precision<fp32>} : vector<128x128xf32>, vector<1x128xf32>, vector<128x1xf32> -> vector<128x1xf32>
    %cst_42 = arith.constant dense<0.000000e+00> : vector<128x1xf32>
    %105 = tpu.matmul %103, %98, %cst_42 {dimension_numbers = #tpu.dot_dimension_numbers<[1], [1], [0], [0], [0, 0, 1, 0], [], []>, precision = #tpu.contract_precision<fp32>} : vector<128x128xf32>, vector<1x128xf32>, vector<128x1xf32> -> vector<128x1xf32>
    %106 = vector.broadcast %104 : vector<128x1xf32> to vector<128x128xf32>
    %107 = vector.broadcast %15 : vector<1x128xf32> to vector<128x128xf32>
    %108 = arith.mulf %106, %107 : vector<128x128xf32>
    %109 = vector.broadcast %17 : vector<1x128xf32> to vector<128x128xf32>
    %110 = arith.addf %108, %109 : vector<128x128xf32>
    %111 = vector.broadcast %105 : vector<128x1xf32> to vector<128x128xf32>
    %112 = arith.subf %110, %111 : vector<128x128xf32>
    %cst_43 = arith.constant -1.000000e+30 : f32
    %113 = vector.broadcast %cst_43 : f32 to vector<128x128xf32>
    %114 = arith.select %101, %113, %112 : vector<128x128xi1>, vector<128x128xf32>
    %cst_44 = arith.constant dense<0xFF800000> : vector<128xf32>
    %115 = vector.multi_reduction <maximumf>, %114, %cst_44 [0] : vector<128x128xf32> to vector<128xf32>
    %116 = vector.shape_cast %115 : vector<128xf32> to vector<1x128xf32>
    %117 = vector.broadcast %116 : vector<1x128xf32> to vector<128x128xf32>
    %118 = arith.subf %114, %117 : vector<128x128xf32>
    %119 = math.exp %118 : vector<128x128xf32>
    %cst_45 = arith.constant dense<0.000000e+00> : vector<128xf32>
    %120 = vector.multi_reduction <add>, %119, %cst_45 [0] : vector<128x128xf32> to vector<128xf32>
    %121 = vector.shape_cast %120 : vector<128xf32> to vector<1x128xf32>
    %122 = vector.broadcast %2 : vector<128x1xf32> to vector<128x128xf32>
    %123 = arith.mulf %122, %119 : vector<128x128xf32>
    %cst_46 = arith.constant dense<0.000000e+00> : vector<128xf32>
    %124 = vector.multi_reduction <add>, %123, %cst_46 [0] : vector<128x128xf32> to vector<128xf32>
    %125 = vector.shape_cast %124 : vector<128xf32> to vector<1x128xf32>
    %cst_47 = arith.constant 1.000000e-30 : f32
    %126 = vector.broadcast %cst_47 : f32 to vector<1x128xf32>
    %127 = arith.maximumf %121, %126 : vector<1x128xf32>
    %128 = arith.divf %125, %127 : vector<1x128xf32>
    %cst_48 = arith.constant 0.000000e+00 : f32
    %cst_49 = arith.constant 1.000000e+00 : f32
    %129 = vector.broadcast %cst_48 : f32 to vector<1x128xf32>
    %130 = arith.maximumf %129, %128 : vector<1x128xf32>
    %131 = vector.broadcast %cst_49 : f32 to vector<1x128xf32>
    %132 = arith.minimumf %131, %130 : vector<1x128xf32>
    %133 = arith.subf %132, %10 : vector<1x128xf32>
    %134 = math.absf %133 : vector<1x128xf32>
    %135 = arith.mulf %134, %134 : vector<1x128xf32>
    %cst_50 = arith.constant dense<0.000000e+00> : vector<1xf32>
    %136 = vector.multi_reduction <add>, %3, %cst_50 [1] : vector<1x128xf32> to vector<1xf32>
    %137 = vector.shape_cast %136 : vector<1xf32> to vector<1x1xf32>
    %cst_51 = arith.constant 1.000000e+00 : f32
    %138 = vector.broadcast %cst_51 : f32 to vector<1x1xf32>
    %139 = arith.subf %137, %138 : vector<1x1xf32>
    %140 = math.absf %139 : vector<1x1xf32>
    %cst_52 = arith.constant 5.000000e-01 : f32
    %141 = vector.broadcast %cst_52 : f32 to vector<1x1xf32>
    %142 = arith.cmpf olt, %140, %141 : vector<1x1xf32>
    %cst_53 = arith.constant 5.000000e-01 : f32
    %143 = vector.broadcast %cst_53 : f32 to vector<1x128xf32>
    %144 = arith.cmpf ogt, %3, %143 : vector<1x128xf32>
    %145 = vector.broadcast %142 : vector<1x1xi1> to vector<1x128xi1>
    %146 = arith.andi %145, %144 : vector<1x128xi1>
    %cst_54 = arith.constant 0.000000e+00 : f32
    %cst_55 = arith.constant 1.000000e+00 : f32
    %147 = vector.broadcast %cst_54 : f32 to vector<1x128xf32>
    %148 = vector.broadcast %cst_55 : f32 to vector<1x128xf32>
    %149 = arith.select %146, %147, %148 : vector<1x128xi1>, vector<1x128xf32>
    %150 = arith.mulf %135, %149 : vector<1x128xf32>
    %cst_56 = arith.constant dense<0.000000e+00> : vector<1xf32>
    %151 = vector.multi_reduction <add>, %150, %cst_56 [1] : vector<1x128xf32> to vector<1xf32>
    %152 = vector.shape_cast %151 : vector<1xf32> to vector<1x1xf32>
    %cst_57 = arith.constant 1.562500e-02 : f32
    %153 = vector.broadcast %cst_57 : f32 to vector<1x1xf32>
    %154 = arith.mulf %153, %152 : vector<1x1xf32>
    %cst_58 = arith.constant -1.000000e+02 : f32
    %155 = vector.broadcast %cst_58 : f32 to vector<1x128xf32>
    %156 = arith.maximumf %11, %155 : vector<1x128xf32>
    %157 = arith.mulf %3, %156 : vector<1x128xf32>
    %cst_59 = arith.constant 1.000000e+00 : f32
    %158 = vector.broadcast %cst_59 : f32 to vector<1x128xf32>
    %159 = arith.subf %158, %3 : vector<1x128xf32>
    %cst_60 = arith.constant -1.000000e+02 : f32
    %160 = vector.broadcast %cst_60 : f32 to vector<1x128xf32>
    %161 = arith.maximumf %14, %160 : vector<1x128xf32>
    %162 = arith.mulf %159, %161 : vector<1x128xf32>
    %163 = arith.addf %157, %162 : vector<1x128xf32>
    %cst_61 = arith.constant dense<0.000000e+00> : vector<1xf32>
    %164 = vector.multi_reduction <add>, %163, %cst_61 [1] : vector<1x128xf32> to vector<1xf32>
    %165 = vector.shape_cast %164 : vector<1xf32> to vector<1x1xf32>
    %cst_62 = arith.constant -7.812500e-03 : f32
    %166 = vector.broadcast %cst_62 : f32 to vector<1x1xf32>
    %167 = arith.mulf %166, %165 : vector<1x1xf32>
    %cst_63 = arith.constant 5.000000e-01 : f32
    %168 = vector.broadcast %cst_63 : f32 to vector<1x1xf32>
    %169 = arith.mulf %168, %167 : vector<1x1xf32>
    %170 = arith.addf %154, %169 : vector<1x1xf32>
    %c0_64 = arith.constant 0 : index
    %c0_65 = arith.constant 0 : index
    %171 = vector.load %arg4[%c0_64, %c0_65] : memref<1x1xf32, #tpu.memory_space<vmem>>, vector<1x1xf32>
    tpu.vector_store %arg4[%c0_64, %c0_65], %170 {strides = array<i32>} : memref<1x1xf32, #tpu.memory_space<vmem>>, vector<1x1xf32>,
    return
  }
}

</mosaic_0001>

<bundles_post_ra>
// kernel: tpu_custom_call.1
= control target key start
LH: loop header
LB: loop body
LE: loop exit
PB: predicated region body
PF: predicated region fallthrough
CT: control target
= control target key end

     0   :  { %s1194_s0 = inlined_call_operand.vmem [shape: f32[8,128], index: 0, kind: input, shape index: {}]   ;;  %s1195_s1 = inlined_call_operand.vmem [shape: f32[8,128], index: 1, kind: input, shape index: {}]   ;;  %s1196_s2 = inlined_call_operand.vmem [shape: f32[128,1], index: 2, kind: input, shape index: {}]   ;;  %s1197_s3 = inlined_call_operand.vmem [shape: f32[1,128], index: 3, kind: input, shape index: {}]   ;;  %s1198_s4 = inlined_call_operand.hbm [shape: f32[1,1], index: 4, kind: output, shape index: {}]  }
   0x1   :  { %v18_v0 = vld [vmem:[%s1194_s0] sm:$0xff] }
   0x2   :  { %v19_v1 = vld [vmem:[%s1195_s1] sm:$0xff] }
   0x3   :  { %v37_v2 = vmul.f32 %v19_v1, %v18_v0 }
   0x4   :  { %9 = vsyncpa [#allocation3], 0  ;;  %v112_v4 = vlaneseq  ;;  %v691_v5 = vmov 0   ;;  %v692_v20 = vmov 0.0   ;;  %vm57_vm6 = vcmask 1040384  }
   0x5   :  { %v38_v3 = vrot.slane %v37_v2, 4  ;;  %622 = vset.pattern.permute.xlu1 %v691_v5  ;;  %621 = vset.pattern.permute.xlu0 %v691_v5 }
   0x6   :  { %v726_v8 = vshrl.u32 %v112_v4, 7  ;;  %v731_v12 = vand.u32 127, %v112_v4 }
   0x7   :  { %v39_v6 = vadd.f32 %v38_v3, %v37_v2 }
   0x8   :  { %v729_v11 = vadd.s32 16, %v726_v8  ;;  %v734_v13 = vadd.s32 24, %v726_v8  ;;  %v737_v15 = vadd.s32 8, %v726_v8  ;;  %vm131_vm1 = vcmp.eq.s32.totalorder %v726_v8, %v731_v12 }
   0x9   :  { %v40_v7 = vrot.slane %v39_v6, 2  ;;  %v746_v17 = vadd.s32 40, %v726_v8  ;;  %v749_v18 = vadd.s32 32, %v726_v8  ;;  %v765_v22 = vsel %vm131_vm1, 1.0, %v692_v20 }
   0xa   :  { %vm133_vm0 = vcmp.eq.s32.totalorder %v729_v11, %v731_v12  ;;  %vm134_vm2 = vcmp.eq.s32.totalorder %v734_v13, %v731_v12  ;;  %vm132_vm3 = vcmp.eq.s32.totalorder %v737_v15, %v731_v12  ;;  %v778_v26 = vadd.s32 56, %v726_v8 }
   0xb   :  { %v41_v9 = vadd.f32 %v40_v7, %v39_v6  ;;  %v759_v21 = vsel %vm133_vm0, 1.0, %v692_v20  ;;  %v775_v25 = vsel %vm134_vm2, 1.0, %v692_v20  ;;  %v784_v27 = vsel %vm132_vm3, 1.0, %v692_v20 }
   0xc   :  { %vm136_vm4 = vcmp.eq.s32.totalorder %v746_v17, %v731_v12  ;;  %vm135_vm5 = vcmp.eq.s32.totalorder %v749_v18, %v731_v12  ;;  %v791_v28 = vadd.s32 48, %v726_v8  ;;  %vm138_vm7 = vcmp.eq.s32.totalorder %v778_v26, %v731_v12 }
   0xd   :  { %v42_v10 = vrot.slane %v41_v9, 1  ;;  %v808_v36 = vsel %vm136_vm4, 1.0, %v692_v20  ;;  %v814_v37 = vsel %vm135_vm5, 1.0, %v692_v20  ;;  %v822_v39 = vadd.s32 72, %v726_v8 }
   0xe   :  { %vm137_vm8 = vcmp.eq.s32.totalorder %v791_v28, %v731_v12  ;;  %v825_v40 = vadd.s32 64, %v726_v8  ;;  %v837_v44 = vsel %vm138_vm7, 1.0, %v692_v20  ;;  %v852_v48 = vadd.s32 88, %v726_v8 }
   0xf   :  { %v43_v14 = vadd.f32 %v42_v10, %v41_v9  ;;  %v843_v45 = vsel %vm137_vm8, 1.0, %v692_v20  ;;  %vm140_vm9 = vcmp.eq.s32.totalorder %v822_v39, %v731_v12  ;;  %v855_v49 = vadd.s32 80, %v726_v8 }
  0x10   :  { %vm139_vm10 = vcmp.eq.s32.totalorder %v825_v40, %v731_v12  ;;  %v867_v54 = vsel %vm140_vm9, 1.0, %v692_v20  ;;  %vm142_vm11 = vcmp.eq.s32.totalorder %v852_v48, %v731_v12  ;;  %v880_v58 = vadd.s32 104, %v726_v8 }
  0x11   :  { %v44_v16 = vmax.f32 %v43_v14, 1e-07  ;;  %v873_v55 = vsel %vm139_vm10, 1.0, %v692_v20  ;;  %vm1199_vm12 = vcmp.eq.s32.totalorder %v855_v49, %v731_v12  ;;  %v883_v59 = vadd.s32 96, %v726_v8 }
  0x12   :  { %v895_v0 = vsel %vm142_vm11, 1.0, %v692_v20  ;;  %v901_v1 = vsel %vm1199_vm12, 1.0, %v692_v20  ;;  %vm144_vm13 = vcmp.eq.s32.totalorder %v880_v58, %v731_v12  ;;  %v908_v4 = vadd.s32 120, %v726_v8 }
  0x13   :  { %v751_v19 = vmin.f32 %v44_v16, 0.9999999  ;;  %vm143_vm14 = vcmp.eq.s32.totalorder %v883_v59, %v731_v12  ;;  %v911_v5 = vadd.s32 112, %v726_v8  ;;  %v923_v14 = vsel %vm144_vm13, 1.0, %v692_v20 }
  0x14   :  { %v929_v16 = vsel %vm143_vm14, 1.0, %v692_v20  ;;  %vm146_vm15 = vcmp.eq.s32.totalorder %v908_v4, %v731_v12 }
  0x15   :  { %v768_v23 = vmul.f32 10.0, %v751_v19  ;;  %v48_v24 = vsub.f32 1.0, %v751_v19  ;;  %vm1200_vm12 = vcmp.eq.s32.totalorder %v911_v5, %v731_v12 }
  0x17   :  { %v181_v29 = vmul.f32 %v759_v21, %v768_v23  ;;  %v54_v30 = vmul.f32 10.0, %v48_v24  ;;  %v55_v31 = vadd.f32 1.0, %v768_v23  ;;  %v179_v32 = vmul.f32 %v765_v22, %v768_v23 }
  0x18   :  { %v182_v34 = vmul.f32 %v775_v25, %v768_v23  ;;  %v180_v35 = vmul.f32 %v784_v27, %v768_v23  ;;  %v184_v42 = vmul.f32 %v808_v36, %v768_v23  ;;  %v183_v43 = vmul.f32 %v814_v37, %v768_v23 }
  0x19   :  { %199 = vadd.xlane.f32.xlu1 %v181_v29  ;;  %v56_v33 = vadd.f32 1.0, %v54_v30  ;;  %195 = vadd.xlane.f32.xlu0 %v179_v32  ;;  %v186_v52 = vmul.f32 %v837_v44, %v768_v23  ;;  %v185_v53 = vmul.f32 %v843_v45, %v768_v23  ;;  %v188_v62 = vmul.f32 %v867_v54, %v768_v23 }
  0x1a   :  { %v187_v63 = vmul.f32 %v873_v55, %v768_v23  ;;  %v190_v9 = vmul.f32 %v895_v0, %v768_v23  ;;  %v189_v10 = vmul.f32 %v901_v1, %v768_v23 }
  0x1b   :  { %v58_v38 = vsel %vm57_vm6, %v55_v31, %v56_v33  ;;  %v192_v33 = vmul.f32 %v923_v14, %v768_v23 }
  0x1c   :  { %v827_v41 = vadd.f32 -1.0, %v58_v38  ;;  %v951_v38 = vsel %vm1200_vm12, 1.0, %v692_v20  ;;  %vm103_vm12 = vcmask 1041408  }
  0x1d   :  { %201 = vadd.xlane.f32.xlu1 %v182_v34  ;;  %197 = vadd.xlane.f32.xlu0 %v180_v35  ;;  %v191_v34 = vmul.f32 %v929_v16, %v768_v23  ;;  %v945_v35 = vsel %vm146_vm15, 1.0, %v692_v20 }
  0x1e   :  { %v60_v46 = vadd.f32 60.458332, %v827_v41  ;;  %v75_v47 = vadd.f32 36.0, %v827_v41 }
  0x20   :  { %v61_v50 = vmul.f32 %v827_v41, %v60_v46  ;;  %v76_v51 = vmul.f32 %v827_v41, %v75_v47 }
  0x21   :  { %205 = vadd.xlane.f32.xlu1 %v184_v42  ;;  %203 = vadd.xlane.f32.xlu0 %v183_v43 }
  0x22   :  { %v62_v56 = vadd.f32 1599.0425, %v61_v50  ;;  %v77_v57 = vadd.f32 546.0, %v76_v51  ;;  %v194_v50 = vmul.f32 %v945_v35, %v768_v23  ;;  %v193_v51 = vmul.f32 %v951_v38, %v768_v23 }
  0x24   :  { %v63_v60 = vmul.f32 %v827_v41, %v62_v56  ;;  %v78_v61 = vmul.f32 %v827_v41, %v77_v57 }
  0x25   :  { %209 = vadd.xlane.f32.xlu1 %v186_v52  ;;  %207 = vadd.xlane.f32.xlu0 %v185_v53  ;;  %v92_v52 = vadd.f32 7.0, %v827_v41 }
  0x26   :  { %v64_v2 = vadd.f32 24165.51, %v63_v60  ;;  %v79_v3 = vadd.f32 4536.0, %v78_v61 }
  0x27   :  { %v93_v57 = vadd.f32 0.5, %v92_v52 }
  0x28   :  { %v65_v6 = vmul.f32 %v827_v41, %v64_v2  ;;  %v80_v7 = vmul.f32 %v827_v41, %v79_v3 }
  0x29   :  { %213 = vadd.xlane.f32.xlu1 %v188_v62  ;;  %211 = vadd.xlane.f32.xlu0 %v187_v63  ;;  %623 = vlog2.f32 %v93_v57 }
  0x2a   :  { %v66_v29 = vadd.f32 228235.22, %v65_v6  ;;  %v81_v30 = vadd.f32 22449.0, %v80_v7 }
  0x2c   :  { %v67_v31 = vmul.f32 %v827_v41, %v66_v29  ;;  %v82_v32 = vmul.f32 %v827_v41, %v81_v30 }
  0x2d   :  { %217 = vadd.xlane.f32.xlu1 %v190_v9  ;;  %215 = vadd.xlane.f32.xlu0 %v189_v10  ;;  %v94_v9 = vadd.f32 0.5, %v827_v41 }
  0x2e   :  { %v68_v42 = vadd.f32 1379496.3, %v67_v31  ;;  %v83_v43 = vadd.f32 67284.0, %v82_v32 }
  0x30   :  { %v69_v46 = vmul.f32 %v827_v41, %v68_v42  ;;  %v84_v47 = vmul.f32 %v827_v41, %v83_v43 }
  0x31   :  { %221 = vadd.xlane.f32.xlu1 %v192_v33  ;;  %219 = vadd.xlane.f32.xlu0 %v191_v34 }
  0x32   :  { %v85_v53 = vadd.f32 118124.0, %v84_v47  ;;  %v70_v56 = vadd.f32 5210869.0, %v69_v46 }
  0x33   :  { %v624_v3 = vpop.eup %623 }
  0x34   :  { %v86_v20 = vmul.f32 %v827_v41, %v85_v53  ;;  %v71_v61 = vmul.f32 %v827_v41, %v70_v56  ;;  %v96_v10 = vmul.f32 0.6931472, %v624_v3  ;;  %v26_v3 = vld [vmem:[%s1196_s2 + $0x30] sm:$0xff] }
  0x35   :  { %225 = vadd.xlane.f32.xlu1 %v194_v50  ;;  %223 = vadd.xlane.f32.xlu0 %v193_v51 }
  0x36   :  { %v87_v60 = vadd.f32 109584.0, %v86_v20  ;;  %v72_v2 = vadd.f32 11246929.0, %v71_v61  ;;  %v97_v30 = vmul.f32 %v96_v10, %v94_v9  ;;  %v28_v9 = vld [vmem:[%s1196_s2 + $0x40] sm:$0xff]  ;;  %v30_v10 = vld [vmem:[%s1196_s2 + $0x50] sm:$0xff] }
  0x38   :  { %v88_v62 = vmul.f32 %v827_v41, %v87_v60  ;;  %v73_v23 = vmul.f32 %v827_v41, %v72_v2  ;;  %v98_v31 = vadd.f32 0.9189385, %v97_v30  ;;  %v25_v2 = vld [vmem:[%s1196_s2 + $0x28] sm:$0xff]  ;;  %v34_v30 = vld [vmem:[%s1196_s2 + $0x70] sm:$0xff] }
  0x3a   :  { %v89_v63 = vadd.f32 40320.0, %v88_v62  ;;  %v74_v6 = vadd.f32 10619610.0, %v73_v23  ;;  %v99_v32 = vsub.f32 %v98_v31, %v93_v57  ;;  %v33_v23 = vld [vmem:[%s1196_s2 + $0x68] sm:$0xff] }
  0x3c   :  { %625 = vrcp.f32 %v89_v63 }
  0x46   :  { %v626_v7 = vpop.eup %625 }
  0x47   :  { %v91_v29 = vmul.f32 %v626_v7, %v74_v6  ;;  %v35_v6 = vld [vmem:[%s1196_s2 + $0x78] sm:$0xff] }
  0x48   :  { %v27_v7 = vld [vmem:[%s1196_s2 + $0x38] sm:$0xff] }
  0x49   :  { %627 = vlog2.f32 %v91_v29  ;;  %v32_v29 = vld [vmem:[%s1196_s2 + $0x60] sm:$0xff] }
  0x4a   :  { %629 = vlog2.f32 %v751_v19 }
  0x4b   :  { %631 = vlog2.f32 %v48_v24 }
  0x53   :  { %v628_v33 = vpop.eup %627 }
  0x54   :  { %v101_v34 = vmul.f32 0.6931472, %v628_v33 }
  0x56   :  { %v102_v42 = vadd.f32 %v101_v34, %v99_v32 }
  0x58   :  { %v104_v43 = vsel %vm103_vm12, %v102_v42, 0.0 }
  0x59   :  { %v105_v46 = vrot.slane %v104_v43, 4 }
  0x5b   :  { %v106_v47 = vadd.f32 %v105_v46, %v104_v43 }
  0x5d   :  { %v107_v50 = vrot.slane %v106_v47, 2 }
  0x5f   :  { %v108_v51 = vadd.f32 %v107_v50, %v106_v47  ;;  %v1032_v50 = vld [vmem:[%s1197_s3] sm:$0x1] }
  0x61   :  { %v109_v52 = vrot.slane %v108_v51, 1 }
  0x63   :  { %v110_v53 = vadd.f32 %v109_v52, %v108_v51 }
  0x65   :  { %v599_v56 = vadd.f32 -17.502308, %v110_v53  ;;  %v554_v53 = vsel %vm57_vm6, %v1032_v50, 0.0 }
  0x67   :  { %v228_v41 = vmul.f32 %v784_v27, %v599_v56  ;;  %v227_v20 = vmul.f32 %v765_v22, %v599_v56  ;;  %v230_v57 = vmul.f32 %v775_v25, %v599_v56  ;;  %v229_v60 = vmul.f32 %v759_v21, %v599_v56 }
  0x68   :  { %v232_v61 = vmul.f32 %v808_v36, %v599_v56  ;;  %v231_v62 = vmul.f32 %v814_v37, %v599_v56  ;;  %v234_v63 = vmul.f32 %v837_v44, %v599_v56  ;;  %v233_v27 = vmul.f32 %v843_v45, %v599_v56 }
  0x69   :  { %245 = vadd.xlane.f32.xlu1 %v228_v41  ;;  %243 = vadd.xlane.f32.xlu0 %v227_v20  ;;  %v236_v22 = vmul.f32 %v867_v54, %v599_v56  ;;  %v235_v25 = vmul.f32 %v873_v55, %v599_v56  ;;  %v238_v21 = vmul.f32 %v895_v0, %v599_v56  ;;  %v21_v55 = vld [vmem:[%s1196_s2 + $0x8] sm:$0xff]  ;;  %v22_v0 = vld [vmem:[%s1196_s2 + $0x10] sm:$0xff] }
  0x6a   :  { %v237_v36 = vmul.f32 %v901_v1, %v599_v56  ;;  %v240_v37 = vmul.f32 %v923_v14, %v599_v56  ;;  %v239_v44 = vmul.f32 %v929_v16, %v599_v56  ;;  %v242_v45 = vmul.f32 %v945_v35, %v599_v56  ;;  %v20_v1 = vld [vmem:[%s1196_s2] sm:$0xff]  ;;  %v23_v14 = vld [vmem:[%s1196_s2 + $0x18] sm:$0xff]  ;;  %v29_v16 = vld [vmem:[%s1196_s2 + $0x48] sm:$0xff] }
  0x6b   :  { %v241_v54 = vmul.f32 %v951_v38, %v599_v56  ;;  %v24_v35 = vld [vmem:[%s1196_s2 + $0x20] sm:$0xff]  ;;  %v31_v38 = vld [vmem:[%s1196_s2 + $0x58] sm:$0xff]  ;;  %s694_s2 = smov [#allocation2]  }
  0x6c   :  { %s590_s3 = sshll.u32 %s694_s2, 4  ;;  %s591_s3 = int_to_ptr.vmem [resolvable:$true] %s590_s3 }
  0x6d   :  { %249 = vadd.xlane.f32.xlu1 %v230_v57  ;;  %247 = vadd.xlane.f32.xlu0 %v229_v60  ;;  %v630_v60 = vpop.eup %629  ;;  %s667_s23 = scalar_lea.vmem %s591_s3, 16  ;;  %s671_s24 = scalar_lea.vmem %s591_s3, 32 }
  0x6e   :  { %p668_p0 = scmp.ne.s32.totalorder %s591_s3, %s667_s23  ;;  %p672_p1 = scmp.lt.s32.totalorder %s591_s3, %s591_s3 }
  0x6f   :  { %p673_p2 = scmp.lt.s32.totalorder %s671_s24, %s667_s23 }
  0x71   :  { %253 = vadd.xlane.f32.xlu1 %v232_v61  ;;  %251 = vadd.xlane.f32.xlu0 %v231_v62  ;;  %p674_p3 = por %p673_p2, %p672_p1 }
  0x73   :  { %p675_p4 = pnand %p674_p3, %p668_p0 }
  0x75   :  { %257 = vadd.xlane.f32.xlu1 %v234_v63  ;;  %255 = vadd.xlane.f32.xlu0 %v233_v27  ;;  %v632_v63 = vpop.eup %631  ;;  %v47_v27 = vmul.f32 0.6931472, %v630_v60 }
  0x79   :  { %261 = vadd.xlane.f32.xlu1 %v236_v22  ;;  %259 = vadd.xlane.f32.xlu0 %v235_v25  ;;  %v50_v22 = vmul.f32 0.6931472, %v632_v63 }
  0x7d   :  { %265 = vadd.xlane.f32.xlu1 %v238_v21  ;;  %263 = vadd.xlane.f32.xlu0 %v237_v36  ;;  %v570_v36 = vmax.f32 %v47_v27, -100.0 }
  0x81   :  { %269 = vadd.xlane.f32.xlu1 %v240_v37  ;;  %267 = vadd.xlane.f32.xlu0 %v239_v44  ;;  %v572_v37 = vsub.f32 1.0, %v1032_v50  ;;  %v573_v44 = vmax.f32 %v50_v22, -100.0 }
  0x85   :  { %273 = vadd.xlane.f32.xlu1 %v242_v45  ;;  %271 = vadd.xlane.f32.xlu0 %v241_v54  ;;  %v571_v45 = vmul.f32 %v570_v36, %v1032_v50  ;;  %v574_v54 = vmul.f32 %v573_v44, %v572_v37 }
  0x96   :  { %436 = vperm.xlu1 %622, %v21_v55  }
  0x9a   :  { %441 = vperm.xlu1 %622, %v22_v0   ;;  %v575_v0 = vadd.f32 %v574_v54, %v571_v45 }
  0x9b   :  { %431 = vperm.xlu0 %621, %v20_v1  }
  0x9c   :  { %v576_v1 = vsel %vm57_vm6, %v575_v0, 0.0 }
  0x9e   :  { %446 = vperm.xlu1 %622, %v23_v14   ;;  %v51_v14 = vsub.f32 %v47_v27, %v50_v22 }
  0x9f   :  { %476 = vperm.xlu0 %621, %v29_v16  }
  0xa2   :  { %451 = vperm.xlu1 %622, %v24_v35  }
  0xa3   :  { %486 = vperm.xlu0 %621, %v31_v38  }
  0xa6   :  { %456 = vperm.xlu1 %622, %v25_v2   ;;  %v200_v31 = vpop.xlane.xlu1 %199  ;;  %v196_v32 = vpop.xlane.xlu0 %195 }
  0xa7   :  { %496 = vperm.xlu0 %621, %v33_v23   ;;  %v277_v38 = vmul.f32 %v200_v31, %v51_v14  ;;  %v275_v2 = vmul.f32 %v196_v32, %v51_v14  ;;  %v1048_v23 = vmul.f32 10.0, %v50_v22 }
  0xa9   :  { %v291_v27 = vadd.f32 %v275_v2, %v1048_v23  ;;  %v293_v44 = vadd.f32 %v277_v38, %v1048_v23 }
  0xaa   :  { %461 = vperm.xlu1 %622, %v26_v3   ;;  %v202_v33 = vpop.xlane.xlu1 %201  ;;  %v198_v34 = vpop.xlane.xlu0 %197 }
  0xab   :  { %506 = vperm.xlu0 %621, %v35_v6   ;;  %v278_v3 = vmul.f32 %v202_v33, %v51_v14  ;;  %v276_v6 = vmul.f32 %v198_v34, %v51_v14 }
  0xad   :  { %v292_v31 = vadd.f32 %v276_v6, %v1048_v23  ;;  %v294_v32 = vadd.f32 %v278_v3, %v1048_v23 }
  0xae   :  { %466 = vperm.xlu1 %622, %v27_v7   ;;  %v206_v42 = vpop.xlane.xlu1 %205  ;;  %v204_v43 = vpop.xlane.xlu0 %203 }
  0xaf   :  { %v280_v7 = vmul.f32 %v206_v42, %v51_v14 }
  0xb1   :  { %v296_v33 = vadd.f32 %v280_v7, %v1048_v23 }
  0xb2   :  { %471 = vperm.xlu1 %622, %v28_v9   ;;  %v210_v46 = vpop.xlane.xlu1 %209  ;;  %v208_v47 = vpop.xlane.xlu0 %207  ;;  %v279_v9 = vmul.f32 %v204_v43, %v51_v14 }
  0xb4   :  { %v295_v34 = vadd.f32 %v279_v9, %v1048_v23 }
  0xb6   :  { %481 = vperm.xlu1 %622, %v30_v10   ;;  %v214_v51 = vpop.xlane.xlu1 %213  ;;  %v212_v52 = vpop.xlane.xlu0 %211 }
  0xb7   :  { %v284_v60 = vmul.f32 %v214_v51, %v51_v14  ;;  %v283_v63 = vmul.f32 %v212_v52, %v51_v14 }
  0xb9   :  { %v299_v22 = vadd.f32 %v283_v63, %v1048_v23 }
  0xba   :  { %491 = vperm.xlu1 %622, %v32_v29   ;;  %v218_v56 = vpop.xlane.xlu1 %217  ;;  %v216_v41 = vpop.xlane.xlu0 %215 }
  0xbb   :  { %v286_v36 = vmul.f32 %v218_v56, %v51_v14  ;;  %v285_v37 = vmul.f32 %v216_v41, %v51_v14  ;;  %v300_v41 = vadd.f32 %v284_v60, %v1048_v23 }
  0xbd   :  { %v302_v45 = vadd.f32 %v286_v36, %v1048_v23  ;;  %v301_v38 = vadd.f32 %v285_v37, %v1048_v23 }
  0xbe   :  { %501 = vperm.xlu1 %622, %v34_v30   ;;  %v222_v20 = vpop.xlane.xlu1 %221  ;;  %v220_v57 = vpop.xlane.xlu0 %219  ;;  %v282_v30 = vmul.f32 %v210_v46, %v51_v14 }
  0xbf   :  { %v288_v46 = vmul.f32 %v222_v20, %v51_v14 }
  0xc0   :  { %v298_v51 = vadd.f32 %v282_v30, %v1048_v23 }
  0xc1   :  { %v304_v30 = vadd.f32 %v288_v46, %v1048_v23 }
  0xc2   :  { %v226_v61 = vpop.xlane.xlu1 %225  ;;  %v1039_v62 = vpop.xlane.xlu0 %223 }
  0xc3   :  { %v290_v2 = vmul.f32 %v226_v61, %v51_v14  ;;  %v289_v60 = vmul.f32 %v1039_v62, %v51_v14 }
  0xc5   :  { %v306_v18 = vadd.f32 %v290_v2, %v1048_v23 }
  0xca   :  { %577 = vadd.xlane.f32.xlu0 %v576_v1 }
  0xe2   :  { %555 = vadd.xlane.f32.xlu1 %v554_v53  ;;  %v281_v53 = vmul.f32 %v208_v47, %v51_v14  ;;  %v287_v47 = vmul.f32 %v220_v57, %v51_v14 }
  0xe4   :  { %v297_v52 = vadd.f32 %v281_v53, %v1048_v23  ;;  %v303_v53 = vadd.f32 %v287_v47, %v1048_v23 }
  0xf6   :  { %v246_v25 = vpop.xlane.xlu1 %245  ;;  %v1041_v21 = vpop.xlane.xlu0 %243 }
  0xf7   :  { %v308_v56 = vsub.f32 %v292_v31, %v246_v25  ;;  %v307_v54 = vsub.f32 %v291_v27, %v1041_v21 }
  0xf9   :  { %v324_v21 = vsel %vm132_vm3, -1e+30, %v308_v56 }
  0xfa   :  { %v250_v24 = vpop.xlane.xlu1 %249  ;;  %v1045_v55 = vpop.xlane.xlu0 %247 }
  0xfb   :  { %v310_v20 = vsub.f32 %v294_v32, %v250_v24  ;;  %v323_v24 = vsel %vm131_vm1, -1e+30, %v307_v54  ;;  %vm1201_vm1 = vcmp.eq.s32.totalorder %v855_v49, %v731_v12 }
  0xfd   :  { %v326_v15 = vsel %vm134_vm2, -1e+30, %v310_v20  ;;  %vm560_vm2 = vcmp.gt.f32.partialorder %v1032_v50, 0.5 }
  0xfe   :  { %v254_v16 = vpop.xlane.xlu1 %253  ;;  %v252_v35 = vpop.xlane.xlu0 %251 }
  0xff   :  { %v312_v0 = vsub.f32 %v296_v33, %v254_v16  ;;  %v311_v1 = vsub.f32 %v295_v34, %v252_v35  ;;  %v309_v16 = vsub.f32 %v293_v44, %v1045_v55  ;;  %v305_v44 = vadd.f32 %v289_v60, %v1048_v23 }
 0x101   :  { %v1076_v35 = vsel %vm136_vm4, -1e+30, %v312_v0  ;;  %v327_v62 = vsel %vm135_vm5, -1e+30, %v311_v1  ;;  %v325_v28 = vsel %vm133_vm0, -1e+30, %v309_v16  ;;  %vm1202_vm0 = vcmp.eq.s32.totalorder %v911_v5, %v731_v12 }
 0x102   :  { %v258_v10 = vpop.xlane.xlu1 %257  ;;  %v256_v29 = vpop.xlane.xlu0 %255  ;;  %v340_v36 = vmax.f32 %v324_v21, %v1076_v35  ;;  %v339_v37 = vmax.f32 %v323_v24, %v327_v62  ;;  %vm582_vm5 = vcmask 0  }
 0x103   :  { %v314_v57 = vsub.f32 %v298_v51, %v258_v10  ;;  %v313_v3 = vsub.f32 %v297_v52, %v256_v29 }
 0x105   :  { %v1087_v55 = vsel %vm138_vm7, -1e+30, %v314_v57  ;;  %v1092_v8 = vsel %vm137_vm8, -1e+30, %v313_v3 }
 0x106   :  { %v262_v42 = vpop.xlane.xlu1 %261  ;;  %v260_v43 = vpop.xlane.xlu0 %259  ;;  %v342_v48 = vmax.f32 %v326_v15, %v1087_v55  ;;  %v341_v31 = vmax.f32 %v325_v28, %v1092_v8 }
 0x107   :  { %v316_v9 = vsub.f32 %v300_v41, %v262_v42  ;;  %v315_v25 = vsub.f32 %v299_v22, %v260_v43 }
 0x109   :  { %v1098_v29 = vsel %vm140_vm9, -1e+30, %v316_v9  ;;  %v1103_v13 = vsel %vm139_vm10, -1e+30, %v315_v25 }
 0x10a   :  { %v266_v6 = vpop.xlane.xlu1 %265  ;;  %v264_v7 = vpop.xlane.xlu0 %263  ;;  %v344_v49 = vmax.f32 %v340_v36, %v1098_v29  ;;  %v343_v32 = vmax.f32 %v339_v37, %v1103_v13 }
 0x10b   :  { %v318_v61 = vsub.f32 %v302_v45, %v266_v6  ;;  %v317_v14 = vsub.f32 %v301_v38, %v264_v7 }
 0x10d   :  { %v1112_v39 = vsel %vm142_vm11, -1e+30, %v318_v61  ;;  %v1117_v40 = vsel %vm1201_vm1, -1e+30, %v317_v14 }
 0x10e   :  { %v270_v17 = vpop.xlane.xlu1 %269  ;;  %v268_v10 = vpop.xlane.xlu0 %267  ;;  %v346_v43 = vmax.f32 %v342_v48, %v1112_v39  ;;  %v345_v59 = vmax.f32 %v341_v31, %v1117_v40 }
 0x10f   :  { %v320_v26 = vsub.f32 %v304_v30, %v270_v17  ;;  %v319_v63 = vsub.f32 %v303_v53, %v268_v10 }
 0x111   :  { %v1122_v27 = vsel %vm144_vm13, -1e+30, %v320_v26  ;;  %v1127_v11 = vsel %vm143_vm14, -1e+30, %v319_v63 }
 0x112   :  { %v274_v33 = vpop.xlane.xlu1 %273  ;;  %v272_v34 = vpop.xlane.xlu0 %271  ;;  %v348_v46 = vmax.f32 %v344_v49, %v1122_v27  ;;  %v347_v23 = vmax.f32 %v343_v32, %v1127_v11 }
 0x113   :  { %v322_v58 = vsub.f32 %v306_v18, %v274_v33  ;;  %v321_v42 = vsub.f32 %v305_v44, %v272_v34 }
 0x114   :  { %v351_v41 = vmax.f32 %v347_v23, %v348_v46 }
 0x115   :  { %v1141_v47 = vsel %vm146_vm15, -1e+30, %v322_v58  ;;  %v1146_v51 = vsel %vm1202_vm0, -1e+30, %v321_v42 }
 0x116   :  { %v350_v52 = vmax.f32 %v346_v43, %v1141_v47  ;;  %v349_v56 = vmax.f32 %v345_v59, %v1146_v51  ;;  %v437_v45 = vpop.permute.xlu1 %436 }
 0x118   :  { %v352_v22 = vmax.f32 %v349_v56, %v350_v52 }
 0x11a   :  { %v353_v54 = vmax.f32 %v351_v41, %v352_v22  ;;  %v442_v38 = vpop.permute.xlu1 %441  ;;  %v432_v44 = vpop.permute.xlu0 %431 }
 0x11c   :  { %v354_v0 = vrot.slane %v353_v54, 4 }
 0x11e   :  { %v355_v1 = vmax.f32 %v353_v54, %v354_v0  ;;  %v447_v57 = vpop.permute.xlu1 %446 }
 0x120   :  { %v356_v2 = vrot.slane %v355_v1, 2 }
 0x122   :  { %v357_v4 = vmax.f32 %v355_v1, %v356_v2  ;;  %v452_v7 = vpop.permute.xlu1 %451 }
 0x124   :  { %v358_v20 = vrot.slane %v357_v4, 1 }
 0x126   :  { %v1150_v3 = vmax.f32 %v357_v4, %v358_v20  ;;  %v457_v61 = vpop.permute.xlu1 %456 }
 0x128   :  { %v361_v12 = vsub.f32 %v324_v21, %v1150_v3  ;;  %v362_v5 = vsub.f32 %v325_v28, %v1150_v3  ;;  %v360_v9 = vsub.f32 %v323_v24, %v1150_v3  ;;  %v363_v25 = vsub.f32 %v326_v15, %v1150_v3 }
 0x129   :  { %v364_v53 = vsub.f32 %v327_v62, %v1150_v3  ;;  %v365_v14 = vsub.f32 %v1076_v35, %v1150_v3  ;;  %v366_v17 = vsub.f32 %v1092_v8, %v1150_v3  ;;  %v367_v15 = vsub.f32 %v1087_v55, %v1150_v3 }
 0x12a   :  { %v378_v6 = vmul.f32 1.442695, %v361_v12  ;;  %v380_v30 = vmul.f32 1.442695, %v362_v5  ;;  %v376_v60 = vmul.f32 1.442695, %v360_v9  ;;  %v462_v10 = vpop.permute.xlu1 %461  ;;  %v368_v18 = vsub.f32 %v1103_v13, %v1150_v3 }
 0x12b   :  { %v382_v16 = vmul.f32 1.442695, %v363_v25  ;;  %v384_v21 = vmul.f32 1.442695, %v364_v53  ;;  %v386_v24 = vmul.f32 1.442695, %v365_v14  ;;  %v369_v35 = vsub.f32 %v1098_v29, %v1150_v3 }
 0x12c   :  { %633 = vpow2.f32 %v378_v6  ;;  %v388_v62 = vmul.f32 1.442695, %v366_v17  ;;  %v390_v63 = vmul.f32 1.442695, %v367_v15  ;;  %v392_v28 = vmul.f32 1.442695, %v368_v18 }
 0x12d   :  { %635 = vpow2.f32 %v380_v30  ;;  %v370_v8 = vsub.f32 %v1117_v40, %v1150_v3  ;;  %v394_v48 = vmul.f32 1.442695, %v369_v35  ;;  %v371_v13 = vsub.f32 %v1112_v39, %v1150_v3 }
 0x12e   :  { %637 = vpow2.f32 %v376_v60  ;;  %v467_v31 = vpop.permute.xlu1 %466  ;;  %v373_v40 = vsub.f32 %v1122_v27, %v1150_v3  ;;  %v372_v46 = vsub.f32 %v1127_v11, %v1150_v3  ;;  %v374_v41 = vsub.f32 %v1146_v51, %v1150_v3 }
 0x12f   :  { %639 = vpow2.f32 %v382_v16  ;;  %v396_v29 = vmul.f32 1.442695, %v370_v8  ;;  %v398_v59 = vmul.f32 1.442695, %v371_v13  ;;  %v375_v2 = vsub.f32 %v1141_v47, %v1150_v3 }
 0x130   :  { %641 = vpow2.f32 %v384_v21  ;;  %v402_v1 = vmul.f32 1.442695, %v373_v40  ;;  %v400_v11 = vmul.f32 1.442695, %v372_v46  ;;  %v404_v5 = vmul.f32 1.442695, %v374_v41 }
 0x131   :  { %643 = vpow2.f32 %v386_v24  ;;  %v406_v30 = vmul.f32 1.442695, %v375_v2 }
 0x132   :  { %645 = vpow2.f32 %v388_v62  ;;  %v472_v22 = vpop.permute.xlu1 %471 }
 0x133   :  { %647 = vpow2.f32 %v390_v63 }
 0x134   :  { %649 = vpow2.f32 %v392_v28 }
 0x135   :  { %651 = vpow2.f32 %v394_v48 }
 0x136   :  { %v634_v26 = vpop.eup %633  ;;  %653 = vpow2.f32 %v396_v29  ;;  %v482_v25 = vpop.permute.xlu1 %481 }
 0x137   :  { %v636_v36 = vpop.eup %635  ;;  %v510_v37 = vmul.f32 %v634_v26, %v437_v45  ;;  %655 = vpow2.f32 %v398_v59 }
 0x138   :  { %v638_v55 = vpop.eup %637  ;;  %v511_v34 = vmul.f32 %v636_v36, %v442_v38  ;;  %v477_v38 = vpop.permute.xlu0 %476  ;;  %657 = vpow2.f32 %v402_v1 }
 0x139   :  { %v408_v49 = vadd.f32 %v638_v55, %v634_v26  ;;  %v509_v32 = vmul.f32 %v638_v55, %v432_v44  ;;  %v640_v33 = vpop.eup %639  ;;  %659 = vpow2.f32 %v400_v11 }
 0x13a   :  { %v642_v43 = vpop.eup %641  ;;  %v512_v23 = vmul.f32 %v640_v33, %v447_v57  ;;  %661 = vpow2.f32 %v404_v5  ;;  %v492_v18 = vpop.permute.xlu1 %491 }
 0x13b   :  { %v409_v58 = vadd.f32 %v636_v36, %v408_v49  ;;  %v525_v42 = vadd.f32 %v510_v37, %v509_v32  ;;  %v644_v56 = vpop.eup %643  ;;  %v513_v45 = vmul.f32 %v642_v43, %v452_v7  ;;  %663 = vpow2.f32 %v406_v30 }
 0x13c   :  { %v646_v27 = vpop.eup %645  ;;  %v514_v4 = vmul.f32 %v644_v56, %v457_v61  ;;  %v487_v21 = vpop.permute.xlu0 %486 }
 0x13d   :  { %v410_v52 = vadd.f32 %v640_v33, %v409_v58  ;;  %v526_v39 = vadd.f32 %v525_v42, %v511_v34  ;;  %v648_v12 = vpop.eup %647  ;;  %v515_v51 = vmul.f32 %v646_v27, %v462_v10 }
 0x13e   :  { %v650_v7 = vpop.eup %649  ;;  %v516_v16 = vmul.f32 %v648_v12, %v467_v31  ;;  %v502_v49 = vpop.permute.xlu1 %501 }
 0x13f   :  { %v527_v54 = vadd.f32 %v526_v39, %v512_v23  ;;  %v411_v0 = vadd.f32 %v642_v43, %v410_v52  ;;  %v652_v14 = vpop.eup %651  ;;  %v517_v61 = vmul.f32 %v650_v7, %v472_v22 }
 0x140   :  { %v654_v17 = vpop.eup %653  ;;  %v518_v24 = vmul.f32 %v652_v14, %v477_v38  ;;  %v497_v28 = vpop.permute.xlu0 %496 }
 0x141   :  { %v412_v20 = vadd.f32 %v644_v56, %v411_v0  ;;  %v528_v57 = vadd.f32 %v527_v54, %v513_v45  ;;  %v656_v62 = vpop.eup %655  ;;  %v519_v35 = vmul.f32 %v654_v17, %v482_v25 }
 0x142   :  { %v658_v8 = vpop.eup %657  ;;  %v520_v36 = vmul.f32 %v656_v62, %v487_v21 }
 0x143   :  { %v413_v6 = vadd.f32 %v646_v27, %v412_v20  ;;  %v529_v9 = vadd.f32 %v528_v57, %v514_v4  ;;  %v660_v44 = vpop.eup %659  ;;  %v522_v33 = vmul.f32 %v658_v8, %v497_v28 }
 0x144   :  { %v521_v31 = vmul.f32 %v660_v44, %v492_v18  ;;  %v662_v32 = vpop.eup %661  ;;  %v507_v42 = vpop.permute.xlu0 %506 }
 0x145   :  { %v530_v53 = vadd.f32 %v529_v9, %v515_v51  ;;  %v414_v60 = vadd.f32 %v648_v12, %v413_v6  ;;  %v664_v58 = vpop.eup %663  ;;  %v523_v43 = vmul.f32 %v662_v32, %v502_v49 }
 0x146   :  { %v524_v46 = vmul.f32 %v664_v58, %v507_v42 }
 0x147   :  { %v531_v47 = vadd.f32 %v530_v53, %v516_v16  ;;  %v415_v3 = vadd.f32 %v650_v7, %v414_v60  ;;  %v693_v53 = vmov 1.0  }
 0x149   :  { %v532_v15 = vadd.f32 %v531_v47, %v517_v61  ;;  %v416_v10 = vadd.f32 %v652_v14, %v415_v3 }
 0x14b   :  { %v417_v26 = vadd.f32 %v654_v17, %v416_v10  ;;  %v533_v63 = vadd.f32 %v532_v15, %v518_v24 }
 0x14d   :  { %v534_v37 = vadd.f32 %v533_v63, %v519_v35  ;;  %v418_v55 = vadd.f32 %v656_v62, %v417_v26 }
 0x14f   :  { %v419_v48 = vadd.f32 %v660_v44, %v418_v55  ;;  %v535_v13 = vadd.f32 %v534_v37, %v520_v36 }
 0x151   :  { %v420_v29 = vadd.f32 %v658_v8, %v419_v48  ;;  %v536_v34 = vadd.f32 %v535_v13, %v521_v31 }
 0x153   :  { %v421_v40 = vadd.f32 %v662_v32, %v420_v29  ;;  %v537_v59 = vadd.f32 %v536_v34, %v522_v33 }
 0x155   :  { %v538_v23 = vadd.f32 %v537_v59, %v523_v43  ;;  %v422_v52 = vadd.f32 %v664_v58, %v421_v40 }
 0x157   :  { %v539_v39 = vadd.f32 %v538_v23, %v524_v46  ;;  %v423_v56 = vrot.slane %v422_v52, 4  ;;  %v578_v47 = vpop.xlane.xlu0 %577 }
 0x158   :  { %v579_v3 = vmul.f32 -0.0078125, %v578_v47 }
 0x159   :  { %v424_v41 = vadd.f32 %v423_v56, %v422_v52  ;;  %v540_v22 = vrot.slane %v539_v39, 4 }
 0x15a   :  { %v580_v17 = vmul.f32 0.5, %v579_v3 }
 0x15b   :  { %v425_v45 = vrot.slane %v424_v41, 2  ;;  %v541_v0 = vadd.f32 %v540_v22, %v539_v39 }
 0x15d   :  { %v426_v54 = vadd.f32 %v425_v45, %v424_v41  ;;  %v542_v38 = vrot.slane %v541_v0, 2 }
 0x15f   :  { %v427_v1 = vrot.slane %v426_v54, 1  ;;  %v543_v11 = vadd.f32 %v542_v38, %v541_v0 }
 0x161   :  { %v428_v27 = vadd.f32 %v427_v1, %v426_v54  ;;  %v544_v4 = vrot.slane %v543_v11, 1 }
 0x163   :  { %v546_v2 = vmax.f32 %v428_v27, 1e-30  ;;  %v545_v12 = vadd.f32 %v544_v4, %v543_v11 }
 0x165   :  { %665 = vrcp.f32 %v546_v2 }
 0x16f   :  { %v556_v20 = vpop.xlane.xlu1 %555  ;;  %v666_v5 = vpop.eup %665 }
 0x170   :  { %v616_v57 = vadd.f32 -1.0, %v556_v20  ;;  %v548_v51 = vmul.f32 %v666_v5, %v545_v12 }
 0x172   :  { %v558_v6 = vand.u32 2147483647, %v616_v57  ;;  %v549_v9 = vmax.f32 %v548_v51, 0.0 }
 0x174   :  { %vm559_vm3 = vcmp.lt.f32.partialorder %v558_v6, 0.5  ;;  %v550_v7 = vmin.f32 %v549_v9, 1.0 }
 0x175   :  { %vm563_vm4 = vmand %vm559_vm3, %vm560_vm2 }
 0x176   :  { %v551_v25 = vsub.f32 %v550_v7, %v751_v19  ;;  %v564_v60 = vsel %vm563_vm4, 0.0, %v693_v53 }
 0x178   :  { %v552_v30 = vand.u32 2147483647, %v551_v25 }
 0x17a   :  { %v553_v16 = vmul.f32 %v552_v30, %v552_v30 }
 0x17c   :  { %v565_v14 = vmul.f32 %v564_v60, %v553_v16 }
 0x17e   :  { %v566_v21 = vsel %vm57_vm6, %v565_v14, 0.0 }
 0x17f   :  { %567 = vadd.xlane.f32.xlu0 %v566_v21 }
 0x20c   :  { %v568_v61 = vpop.xlane.xlu0 %567 }
 0x20d   :  { %v569_v50 = vmul.f32 0.015625, %v568_v61 }
 0x20f   :  { %v581_v24 = vadd.f32 %v580_v17, %v569_v50 }
 0x211   :  { %583 = vst.msk [vmem:[#allocation2] sm:$0x1] %vm582_vm5, %v581_v24 }
 0x212   :  { %678 = shalt.err (!%p675_p4)
}
 0x213   :  { %s679_s27 = scalar_lea.hbm %s1198_s4, 16 }
 0x214   :  { %p680_p5 = scmp.ne.s32.totalorder %s1198_s4, %s679_s27  ;;  %p683_p6 = scmp.lt.u32.totalorder %s679_s27, %s1198_s4 }
 0x216   :  { %p685_p7 = pnand %p683_p6, %p680_p5 }
 0x218   :  { %688 = shalt.err (!%p685_p7)
}
 0x219   :  { %593 = dma.vmem_to_hbm [thread:$0]  %s591_s3, 16, %s1198_s4, [#allocation3]  }
 0x21a   :  { %689 = dma.done.wait [#allocation3], 16  }
 0x21b   :  { %690 = vsyncadd [#allocation3], 4294967280 }
 0x21c   :  { %597 = vsyncpa [#allocation3], 1 }

</bundles_post_ra>
